<compile_context>
chip_gen: v5e
topology: v5e:2x2
jax: 0.10.0
libtpu: 0.0.40
codegen_flags: <defaults>
</compile_context>

<pallas_src>
import functools

import jax
import jax.numpy as jnp
from jax import lax
from jax.experimental import pallas as pl
from jax.experimental.pallas import tpu as pltpu


def _sftl_partial_kernel(yp_ref, yt_ref, typ_ref, syt_ref, syp_ref, *,
                         n_valid, tile_n, cw, n_chunks, tps,
                         has_ragged, has_empty, unroll):
    c = pl.program_id(0)          # tile-range split (parallel; 2 TCs on v7x)
    t = pl.program_id(1)          # tiles within this core's range (arbitrary)
    rows = typ_ref.shape[0]

    @pl.when(t == 0)
    def _():
        typ_ref[...] = jnp.zeros_like(typ_ref)
        syt_ref[...] = jnp.zeros_like(syt_ref)
        syp_ref[...] = jnp.zeros_like(syp_ref)

    def chunk_body(rem, base_iota):
        # rem is None (full tile) or a dynamic scalar count of valid lanes.
        def body(k, carry):
            lo = pl.multiple_of(k * cw, cw)
            yp = yp_ref[:, pl.ds(lo, cw)].astype(jnp.float32)
            yt = yt_ref[:, pl.ds(lo, cw)].astype(jnp.float32)
            if rem is not None:
                mask = (base_iota + lo) < rem
                yp = jnp.where(mask, yp, 0.0)
                yt = jnp.where(mask, yt, 0.0)
            typ_ref[...] += yt * yp
            syt_ref[...] += yt
            syp_ref[...] += yp
            return carry
        return body

    def run_full():
        lax.fori_loop(0, n_chunks, chunk_body(None, None), 0, unroll=unroll)

    if not (has_ragged or has_empty):
        run_full()                        # fast path: every tile is full
    else:
        g = c * tps + t                   # global tile index
        rem = n_valid - g * tile_n        # valid lanes left in this tile

        @pl.when(rem >= tile_n)
        def _():
            run_full()

        if has_ragged:
            @pl.when(jnp.logical_and(rem > 0, rem < tile_n))
            def _():
                base_iota = lax.broadcasted_iota(jnp.int32, (rows, cw), 1)
                lax.fori_loop(0, n_chunks, chunk_body(rem, base_iota), 0,
                              unroll=unroll)
        # rem <= 0: tile past the end of the data (uneven split) -> skip.


def symmetric_focal_tversky_loss(y_pred, y_true_onehot,
                                 delta=0.6, gamma=0.5, epsilon=1e-6,
                                 tile_n=None):
    assert y_pred.shape == y_true_onehot.shape
    B, C = y_pred.shape[0], y_pred.shape[1]
    rows = B * C
    N = 1
    for d in y_pred.shape[2:]:
        N *= d

    # Fold spatial into sublanes when B*C under-fills the 8 f32 sublanes.
    fold = 1
    if rows < 8 and 8 % rows == 0 and N % (8 // rows) == 0:
        fold = 8 // rows
    rows_f = rows * fold
    N_f = N // fold

    # Row-major reshape (free, no HBM traffic): (B,C,H,W) -> (rows*fold, N/fold).
    yp = jnp.reshape(y_pred, (rows_f, N_f))
    yt = jnp.reshape(y_true_onehot, (rows_f, N_f))
    itemsize = max(jnp.dtype(yp.dtype).itemsize, jnp.dtype(yt.dtype).itemsize)

    lane_n = pl.cdiv(N_f, 128) * 128
    if tile_n is None:
        # ~2 MiB per input block: 2 inputs x 2 pipeline buffers ~= 8 MiB,
        # safely under the 16 MiB v5e scoped-VMEM default (32 MiB v6e/v7x).
        tile_n = (2 * 1024 * 1024) // (rows_f * itemsize)
    tile_n = int(min(max(int(tile_n), 128), lane_n))
    tile_n = (tile_n // 128) * 128

    # Chunk width: up to 512 lanes, shrunk for large B*C so a (rows_f, cw)
    # slice stays a modest number of live vregs.
    cw = int(max(128, min(512, ((16384 // rows_f) // 128) * 128, tile_n)))
    tile_n = max(cw, (tile_n // cw) * cw)
    n_chunks = tile_n // cw

    n_tiles = pl.cdiv(N_f, tile_n)
    n_split = 2 if n_tiles >= 2 else 1     # engage both v7x TensorCores
    tps = pl.cdiv(n_tiles, n_split)        # tiles per core

    has_ragged = (N_f % tile_n) != 0
    has_empty = (n_split * tps) != n_tiles
    if n_chunks <= 8:
        unroll = True
    else:
        unroll = max(d for d in (8, 4, 2, 1) if n_chunks % d == 0)

    kernel = functools.partial(
        _sftl_partial_kernel, n_valid=N_f, tile_n=tile_n, cw=cw,
        n_chunks=n_chunks, tps=tps, has_ragged=has_ragged,
        has_empty=has_empty, unroll=unroll)

    def in_map(c, t):
        # Clamp so the (rare) past-the-end tile of an uneven split re-reads
        # the last valid block instead of going out of bounds (it is skipped
        # inside the kernel anyway).
        return (0, jnp.minimum(c * tps + t, n_tiles - 1))

    acc_shape = jax.ShapeDtypeStruct((n_split, rows_f, cw), jnp.float32)
    acc_spec = pl.BlockSpec((None, rows_f, cw), lambda c, t: (c, 0, 0))

    bytes_accessed = int(yp.size * yp.dtype.itemsize
                         + yt.size * yt.dtype.itemsize
                         + 3 * n_split * rows_f * cw * 4)

    typ, syt, syp = pl.pallas_call(
        kernel,
        out_shape=(acc_shape, acc_shape, acc_shape),
        grid_spec=pltpu.PrefetchScalarGridSpec(
            num_scalar_prefetch=0,
            grid=(n_split, tps),
            in_specs=[
                pl.BlockSpec((rows_f, tile_n), in_map),
                pl.BlockSpec((rows_f, tile_n), in_map),
            ],
            out_specs=(acc_spec, acc_spec, acc_spec),
        ),
        compiler_params=pltpu.CompilerParams(
            dimension_semantics=("parallel", "arbitrary")),
        cost_estimate=pl.CostEstimate(
            flops=int(4 * rows_f * N_f), transcendentals=0,
            bytes_accessed=bytes_accessed),
    )(yp, yt)

    # Tiny epilogue in plain jnp: combine core halves + lanes (+ folded rows),
    # then the tversky / focal math; fn/fp recovered algebraically.
    tp = jnp.sum(typ, axis=(0, 2))
    s_t = jnp.sum(syt, axis=(0, 2))
    s_p = jnp.sum(syp, axis=(0, 2))
    if fold > 1:
        tp = tp.reshape(rows, fold).sum(axis=1)
        s_t = s_t.reshape(rows, fold).sum(axis=1)
        s_p = s_p.reshape(rows, fold).sum(axis=1)
    fn = s_t - tp
    fp = s_p - tp
    tversky = (tp + epsilon) / (tp + delta * fn + (1.0 - delta) * fp + epsilon)
    loss = jnp.power(jnp.maximum(1.0 - tversky, 0.0), gamma)
    return jnp.mean(loss)


def _reference(y_pred, y_true, delta=0.6, gamma=0.5, epsilon=1e-6):
    B, C = y_pred.shape[:2]
    yp = y_pred.reshape(B, C, -1).astype(jnp.float32)
    yt = y_true.reshape(B, C, -1).astype(jnp.float32)
    tp = jnp.sum(yt * yp, axis=2)
    fn = jnp.sum(yt * (1.0 - yp), axis=2)
    fp = jnp.sum((1.0 - yt) * yp, axis=2)
    tversky = (tp + epsilon) / (tp + delta * fn + (1 - delta) * fp + epsilon)
    return jnp.mean(jnp.power(jnp.maximum(1.0 - tversky, 0.0), gamma))


if __name__ == "__main__":
    key = jax.random.PRNGKey(0)
    k1, k2, k3, k4, k5, k6 = jax.random.split(key, 6)

    # 1) Primary shape (B, C, H, W) = (2, 4, 16, 16), f32, auto tiling.
    B, C, H, W = 2, 4, 16, 16
    y_pred = jax.nn.softmax(jax.random.normal(k1, (B, C, H, W), jnp.float32), axis=1)
    y_true = jax.nn.one_hot(jax.random.randint(k2, (B, H, W), 0, C), C,
                            axis=1, dtype=jnp.float32)
    loss = jax.block_until_ready(symmetric_focal_tversky_loss(y_pred, y_true))
    ref = _reference(y_pred, y_true)
    assert jnp.allclose(loss, ref, atol=1e-5, rtol=1e-5), (loss, ref)

    # 2) Ragged tail + bf16 inputs (halved HBM traffic), small explicit tile.
    H2, W2 = 12, 12
    y_pred2 = jax.nn.softmax(jax.random.normal(k3, (B, C, H2, W2), jnp.float32),
                             axis=1).astype(jnp.bfloat16)
    y_true2 = jax.nn.one_hot(jax.random.randint(k4, (B, H2, W2), 0, C), C,
                             axis=1, dtype=jnp.bfloat16)
    loss2 = jax.block_until_ready(
        symmetric_focal_tversky_loss(y_pred2, y_true2, tile_n=128))
    ref2 = _reference(y_pred2, y_true2)
    assert jnp.allclose(loss2, ref2, atol=1e-4, rtol=1e-4), (loss2, ref2)

    # 3) Small-C (row folding) + 2-way tile split + ragged tail + empty-tile skip.
    B3, C3, H3, W3 = 2, 2, 48, 48
    y_pred3 = jax.nn.softmax(jax.random.normal(k5, (B3, C3, H3, W3), jnp.float32), axis=1)
    y_true3 = jax.nn.one_hot(jax.random.randint(k6, (B3, H3, W3), 0, C3), C3,
                             axis=1, dtype=jnp.float32)
    loss3 = jax.block_until_ready(
        symmetric_focal_tversky_loss(y_pred3, y_true3, tile_n=512))
    ref3 = _reference(y_pred3, y_true3)
    assert jnp.allclose(loss3, ref3, atol=1e-5, rtol=1e-5), (loss3, ref3)

    print("KERNEL_OK")
</pallas_src>

<mosaic_0001>
module attributes {stable_mosaic.version = 11 : i64} {
  func.func @_sftl_partial_kernel(%arg0: i32, %arg1: i32, %arg2: memref<8x256xf32, #tpu.memory_space<vmem>>, %arg3: memref<8x256xf32, #tpu.memory_space<vmem>>, %arg4: memref<1x8x256xf32, #tpu.memory_space<vmem>>, %arg5: memref<1x8x256xf32, #tpu.memory_space<vmem>>, %arg6: memref<1x8x256xf32, #tpu.memory_space<vmem>>) attributes {dimension_semantics = [#tpu.dimension_semantics<parallel>, #tpu.dimension_semantics<arbitrary>], iteration_bounds = array<i64: 1, 1>, scalar_prefetch = 0 : i64, scratch_operands = 0 : i64, tpu.core_type = #tpu.core_type<tc>, window_params = [{transform_indices = @transform_0, window_bounds = array<i64: 8, 256>}, {transform_indices = @transform_1, window_bounds = array<i64: 8, 256>}, {transform_indices = @transform_2, window_bounds = array<i64: 1, 8, 256>}, {transform_indices = @transform_3, window_bounds = array<i64: 1, 8, 256>}, {transform_indices = @transform_4, window_bounds = array<i64: 1, 8, 256>}]} {
    %c0_i32 = arith.constant 0 : i32
    %0 = arith.cmpi eq, %arg1, %c0_i32 : i32
    %1 = arith.extui %0 : i1 to i32
    %c0_i32_0 = arith.constant 0 : i32
    %2 = arith.cmpi ne, %1, %c0_i32_0 : i32
    scf.if %2 {
      %cst = arith.constant 0.000000e+00 : f32
      %28 = vector.broadcast %cst : f32 to vector<8x256xf32>
      %c0_21 = arith.constant 0 : index
      %c0_22 = arith.constant 0 : index
      %c0_23 = arith.constant 0 : index
      %29 = vector.load %arg4[%c0_21, %c0_22, %c0_23] : memref<1x8x256xf32, #tpu.memory_space<vmem>>, vector<1x8x256xf32>
      %30 = vector.shape_cast %29 : vector<1x8x256xf32> to vector<8x256xf32>
      %31 = vector.shape_cast %28 : vector<8x256xf32> to vector<1x8x256xf32>
      tpu.vector_store %arg4[%c0_21, %c0_22, %c0_23], %31 {strides = array<i32>} : memref<1x8x256xf32, #tpu.memory_space<vmem>>, vector<1x8x256xf32>,
      %cst_24 = arith.constant 0.000000e+00 : f32
      %32 = vector.broadcast %cst_24 : f32 to vector<8x256xf32>
      %c0_25 = arith.constant 0 : index
      %c0_26 = arith.constant 0 : index
      %c0_27 = arith.constant 0 : index
      %33 = vector.load %arg5[%c0_25, %c0_26, %c0_27] : memref<1x8x256xf32, #tpu.memory_space<vmem>>, vector<1x8x256xf32>
      %34 = vector.shape_cast %33 : vector<1x8x256xf32> to vector<8x256xf32>
      %35 = vector.shape_cast %32 : vector<8x256xf32> to vector<1x8x256xf32>
      tpu.vector_store %arg5[%c0_25, %c0_26, %c0_27], %35 {strides = array<i32>} : memref<1x8x256xf32, #tpu.memory_space<vmem>>, vector<1x8x256xf32>,
      %cst_28 = arith.constant 0.000000e+00 : f32
      %36 = vector.broadcast %cst_28 : f32 to vector<8x256xf32>
      %c0_29 = arith.constant 0 : index
      %c0_30 = arith.constant 0 : index
      %c0_31 = arith.constant 0 : index
      %37 = vector.load %arg6[%c0_29, %c0_30, %c0_31] : memref<1x8x256xf32, #tpu.memory_space<vmem>>, vector<1x8x256xf32>
      %38 = vector.shape_cast %37 : vector<1x8x256xf32> to vector<8x256xf32>
      %39 = vector.shape_cast %36 : vector<8x256xf32> to vector<1x8x256xf32>
      tpu.vector_store %arg6[%c0_29, %c0_30, %c0_31], %39 {strides = array<i32>} : memref<1x8x256xf32, #tpu.memory_space<vmem>>, vector<1x8x256xf32>,
    } else {
    }
    %c0_i32_1 = arith.constant 0 : i32
    %c256_i32 = arith.constant 256 : i32
    %3 = arith.muli %c0_i32_1, %c256_i32 : i32
    %4 = tpu.assume_multiple %3, 256 : i32
    %c0 = arith.constant 0 : index
    %5 = arith.index_cast %4 : i32 to index
    %6 = vector.load %arg2[%c0, %5] : memref<8x256xf32, #tpu.memory_space<vmem>>, vector<8x256xf32>
    %c0_2 = arith.constant 0 : index
    %7 = arith.index_cast %4 : i32 to index
    %8 = vector.load %arg3[%c0_2, %7] : memref<8x256xf32, #tpu.memory_space<vmem>>, vector<8x256xf32>
    %c0_3 = arith.constant 0 : index
    %c0_4 = arith.constant 0 : index
    %c0_5 = arith.constant 0 : index
    %9 = vector.load %arg4[%c0_3, %c0_4, %c0_5] : memref<1x8x256xf32, #tpu.memory_space<vmem>>, vector<1x8x256xf32>
    %10 = vector.shape_cast %9 : vector<1x8x256xf32> to vector<8x256xf32>
    %11 = arith.mulf %8, %6 : vector<8x256xf32>
    %12 = arith.addf %10, %11 : vector<8x256xf32>
    %c0_6 = arith.constant 0 : index
    %c0_7 = arith.constant 0 : index
    %c0_8 = arith.constant 0 : index
    %13 = vector.load %arg4[%c0_6, %c0_7, %c0_8] : memref<1x8x256xf32, #tpu.memory_space<vmem>>, vector<1x8x256xf32>
    %14 = vector.shape_cast %13 : vector<1x8x256xf32> to vector<8x256xf32>
    %15 = vector.shape_cast %12 : vector<8x256xf32> to vector<1x8x256xf32>
    tpu.vector_store %arg4[%c0_6, %c0_7, %c0_8], %15 {strides = array<i32>} : memref<1x8x256xf32, #tpu.memory_space<vmem>>, vector<1x8x256xf32>,
    %c0_9 = arith.constant 0 : index
    %c0_10 = arith.constant 0 : index
    %c0_11 = arith.constant 0 : index
    %16 = vector.load %arg5[%c0_9, %c0_10, %c0_11] : memref<1x8x256xf32, #tpu.memory_space<vmem>>, vector<1x8x256xf32>
    %17 = vector.shape_cast %16 : vector<1x8x256xf32> to vector<8x256xf32>
    %18 = arith.addf %17, %8 : vector<8x256xf32>
    %c0_12 = arith.constant 0 : index
    %c0_13 = arith.constant 0 : index
    %c0_14 = arith.constant 0 : index
    %19 = vector.load %arg5[%c0_12, %c0_13, %c0_14] : memref<1x8x256xf32, #tpu.memory_space<vmem>>, vector<1x8x256xf32>
    %20 = vector.shape_cast %19 : vector<1x8x256xf32> to vector<8x256xf32>
    %21 = vector.shape_cast %18 : vector<8x256xf32> to vector<1x8x256xf32>
    tpu.vector_store %arg5[%c0_12, %c0_13, %c0_14], %21 {strides = array<i32>} : memref<1x8x256xf32, #tpu.memory_space<vmem>>, vector<1x8x256xf32>,
    %c0_15 = arith.constant 0 : index
    %c0_16 = arith.constant 0 : index
    %c0_17 = arith.constant 0 : index
    %22 = vector.load %arg6[%c0_15, %c0_16, %c0_17] : memref<1x8x256xf32, #tpu.memory_space<vmem>>, vector<1x8x256xf32>
    %23 = vector.shape_cast %22 : vector<1x8x256xf32> to vector<8x256xf32>
    %24 = arith.addf %23, %6 : vector<8x256xf32>
    %c0_18 = arith.constant 0 : index
    %c0_19 = arith.constant 0 : index
    %c0_20 = arith.constant 0 : index
    %25 = vector.load %arg6[%c0_18, %c0_19, %c0_20] : memref<1x8x256xf32, #tpu.memory_space<vmem>>, vector<1x8x256xf32>
    %26 = vector.shape_cast %25 : vector<1x8x256xf32> to vector<8x256xf32>
    %27 = vector.shape_cast %24 : vector<8x256xf32> to vector<1x8x256xf32>
    tpu.vector_store %arg6[%c0_18, %c0_19, %c0_20], %27 {strides = array<i32>} : memref<1x8x256xf32, #tpu.memory_space<vmem>>, vector<1x8x256xf32>,
    %c1_i32 = arith.constant 1 : i32
    return
  }
  func.func @transform_0(%arg0: i32, %arg1: i32) -> (i32, i32) {
    %c1_i32 = arith.constant 1 : i32
    %0 = arith.muli %arg0, %c1_i32 : i32
    %1 = arith.addi %0, %arg1 : i32
    %c0_i32 = arith.constant 0 : i32
    %2 = arith.minsi %1, %c0_i32 : i32
    %c0_i32_0 = arith.constant 0 : i32
    %c0_i32_1 = arith.constant 0 : i32
    return %c0_i32_0, %2 : i32, i32
  }
  func.func @transform_1(%arg0: i32, %arg1: i32) -> (i32, i32) {
    %c1_i32 = arith.constant 1 : i32
    %0 = arith.muli %arg0, %c1_i32 : i32
    %1 = arith.addi %0, %arg1 : i32
    %c0_i32 = arith.constant 0 : i32
    %2 = arith.minsi %1, %c0_i32 : i32
    %c0_i32_0 = arith.constant 0 : i32
    %c0_i32_1 = arith.constant 0 : i32
    return %c0_i32_0, %2 : i32, i32
  }
  func.func @transform_2(%arg0: i32, %arg1: i32) -> (i32, i32, i32) {
    %c0_i32 = arith.constant 0 : i32
    %c0_i32_0 = arith.constant 0 : i32
    %c0_i32_1 = arith.constant 0 : i32
    return %arg0, %c0_i32, %c0_i32_0 : i32, i32, i32
  }
  func.func @transform_3(%arg0: i32, %arg1: i32) -> (i32, i32, i32) {
    %c0_i32 = arith.constant 0 : i32
    %c0_i32_0 = arith.constant 0 : i32
    %c0_i32_1 = arith.constant 0 : i32
    return %arg0, %c0_i32, %c0_i32_0 : i32, i32, i32
  }
  func.func @transform_4(%arg0: i32, %arg1: i32) -> (i32, i32, i32) {
    %c0_i32 = arith.constant 0 : i32
    %c0_i32_0 = arith.constant 0 : i32
    %c0_i32_1 = arith.constant 0 : i32
    return %arg0, %c0_i32, %c0_i32_0 : i32, i32, i32
  }
}

</mosaic_0001>

<bundles_post_ra>
// kernel: tpu_custom_call.1
= control target key start
LH: loop header
LB: loop body
LE: loop exit
PB: predicated region body
PF: predicated region fallthrough
CT: control target
= control target key end

     0   :  { %10 = vsyncpa [#allocation3], 0  ;;  %s330_s0 = inlined_call_operand.hbm [shape: f32[8,256], index: 0, kind: input, shape index: {}]   ;;  %s331_s1 = inlined_call_operand.hbm [shape: f32[8,256], index: 1, kind: input, shape index: {}]   ;;  %s332_s2 = inlined_call_operand.hbm [shape: f32[1,8,256], index: 2, kind: output, shape index: {0}]   ;;  %s333_s3 = inlined_call_operand.hbm [shape: f32[1,8,256], index: 3, kind: output, shape index: {1}]   ;;  %s334_s4 = inlined_call_operand.hbm [shape: f32[1,8,256], index: 4, kind: output, shape index: {2}]  }
   0x1   :  { %11 = vsyncpa [#allocation6], 0 }
   0x2   :  { %12 = vsyncpa [#allocation4], 0 }
   0x3   :  { %13 = vsyncpa [#allocation9], 0  ;;  %s25_s17 = sshll.u32 %s330_s0, 4  ;;  %s285_s18 = smov [#allocation2]   ;;  %s26_s17 = int_to_ptr.hbm [resolvable:$true] %s25_s17 }
   0x4   :  { %s27_s19 = sshll.u32 %s285_s18, 4  ;;  %s42_s22 = sshll.u32 %s331_s1, 4  ;;  %s28_s19 = int_to_ptr.vmem [resolvable:$true] %s27_s19  ;;  %s43_s22 = int_to_ptr.hbm [resolvable:$true] %s42_s22 }
   0x5   :  { %30 = dma.hbm_to_vmem [thread:$0]  %s26_s17, 256, %s28_s19, [#allocation3]  }
   0x6   :  { %s286_s23 = smov [#allocation5]  }
   0x7   :  { %s44_s24 = sshll.u32 %s286_s23, 4  ;;  %s45_s24 = int_to_ptr.vmem [resolvable:$true] %s44_s24 }
   0x8   :  { %47 = dma.hbm_to_vmem [thread:$0]  %s43_s22, 256, %s45_s24, [#allocation6]  }
   0x9   :  { %277 = dma.done.wait [#allocation3], 256  }
   0xa   :  { %278 = vsyncadd [#allocation3], 4294967040 }
   0xb   :  { %279 = dma.done.wait [#allocation6], 256  }
   0xc   :  { %280 = vsyncadd [#allocation6], 4294967040  ;;  %s287_s25 = smov [#allocation8]   ;;  %s116_s28 = sshll.u32 %s333_s3, 4  ;;  %v76_v0 = vld [vmem:[#allocation5] sm:$0xff]  ;;  %v77_v1 = vld [vmem:[#allocation5 + $0x8] sm:$0xff]  ;;  %s117_s28 = int_to_ptr.hbm [resolvable:$true] %s116_s28 }
   0xd   :  { %s114_s0 = sshll.u32 %s287_s25, 4  ;;  %v74_v2 = vld [vmem:[#allocation2] sm:$0xff]  ;;  %v75_v4 = vld [vmem:[#allocation2 + $0x8] sm:$0xff]  ;;  %s288_s1 = smov [#allocation7]   ;;  %90 = vst [vmem:[#allocation8] sm:$0xff] %v76_v0  ;;  %s115_s0 = int_to_ptr.vmem [resolvable:$true] %s114_s0 }
   0xe   :  { %v80_v3 = vmul.f32 %v76_v0, %v74_v2  ;;  %s103_s29 = sshll.u32 %s288_s1, 4  ;;  %s105_s6 = sshll.u32 %s332_s2, 4  ;;  %v81_v5 = vmul.f32 %v77_v1, %v75_v4  ;;  %91 = vst [vmem:[#allocation8 + $0x8] sm:$0xff] %v77_v1  ;;  %s104_s29 = int_to_ptr.vmem [resolvable:$true] %s103_s29  ;;  %s106_s6 = int_to_ptr.hbm [resolvable:$true] %s105_s6 }
   0xf   :  { %s289_s7 = smov [#allocation10]   ;;  %s127_s3 = sshll.u32 %s334_s4, 4  ;;  %96 = vst [vmem:[#allocation10] sm:$0xff] %v74_v2  ;;  %s128_s3 = int_to_ptr.hbm [resolvable:$true] %s127_s3 }
  0x10   :  { %s125_s8 = sshll.u32 %s289_s7, 4  ;;  %84 = vst [vmem:[#allocation7] sm:$0xff] %v80_v3  ;;  %s126_s8 = int_to_ptr.vmem [resolvable:$true] %s125_s8 }
  0x11   :  { %119 = dma.vmem_to_hbm [thread:$0]  %s115_s0, 256, %s117_s28, [#allocation9]   ;;  %85 = vst [vmem:[#allocation7 + $0x8] sm:$0xff] %v81_v5 }
  0x12   :  { %108 = dma.vmem_to_hbm [thread:$0]  %s104_s29, 256, %s106_s6, [#allocation4]   ;;  %97 = vst [vmem:[#allocation10 + $0x8] sm:$0xff] %v75_v4 }
  0x13   :  { %130 = dma.vmem_to_hbm [thread:$0]  %s126_s8, 256, %s128_s3, [#allocation9]  }
  0x14   :  { %281 = dma.done.wait [#allocation4], 256  }
  0x15   :  { %282 = vsyncadd [#allocation4], 4294967040 }
  0x16   :  { %283 = dma.done.wait [#allocation9], 512  }
  0x17   :  { %284 = vsyncadd [#allocation9], 4294966784 }
  0x18   :  { %143 = vsyncpa [#allocation3], 1 }
  0x19   :  { %144 = vsyncpa [#allocation6], 1 }
  0x1a   :  { %145 = vsyncpa [#allocation4], 1 }
  0x1b   :  { %146 = vsyncpa [#allocation9], 1 }

</bundles_post_ra>
